<compile_context>
chip_gen: v5e
topology: v5e:2x2
jax: 0.10.0
libtpu: 0.0.40
codegen_flags: <defaults>
</compile_context>

<pallas_src>
import jax
import jax.numpy as jnp
from jax import lax
from jax.experimental import pallas as pl
from jax.experimental.pallas import tpu as pltpu

VMEM = pltpu.MemorySpace.VMEM
SMEM = pltpu.MemorySpace.SMEM


def _mm(a, b):
    """MXU matmul: bf16 operands, f32 accumulation."""
    return jnp.dot(a.astype(jnp.bfloat16), b.astype(jnp.bfloat16),
                   preferred_element_type=jnp.float32)


# --------------------------------------------------------------------------- #
# Fused kernel: gene+peak encoders, shared variational heads, KL, theta,
# topic-word softmax (lane-dense), decode, NLL, and batch-mean reductions.
# --------------------------------------------------------------------------- #
def _gnn_etm_fused_kernel(
        # normalized bows (encoder inputs) and raw counts
        gene_norm_ref, peak_norm_ref, gene_raw_ref, peak_raw_ref,
        # q_theta_gene / q_theta_peak MLPs (weights pre-transposed to (in, out))
        g_w1_ref, g_b1_ref, g_w2_ref, g_b2_ref,
        p_w1_ref, p_b1_ref, p_w2_ref, p_b2_ref,
        # shared variational heads
        wmu_ref, bmu_ref, wls_ref, bls_ref,
        # topic embeddings + alpha projections (PyTorch weight layout (K, E))
        rho_ref, w_alpha_ref, eta_ref, w_alpha_star_ref,
        # outputs: (1,1) SMEM scalars
        recon_ref, kld_ref):
    B = gene_raw_ref.shape[0]
    inv_B = 1.0 / B

    # ---- encoders: Linear+ReLU stacks (nn.Dropout is identity in eval) ----
    h_g = jnp.maximum(_mm(gene_norm_ref[...], g_w1_ref[...]) + g_b1_ref[...], 0.0)
    h_g = jnp.maximum(_mm(h_g, g_w2_ref[...]) + g_b2_ref[...], 0.0)
    h_p = jnp.maximum(_mm(peak_norm_ref[...], p_w1_ref[...]) + p_b1_ref[...], 0.0)
    h_p = jnp.maximum(_mm(h_p, p_w2_ref[...]) + p_b2_ref[...], 0.0)

    # ---- shared mu / logsigma heads on the stacked (2B, H) block ----
    h = jnp.concatenate([h_g, h_p], axis=0)               # (2B, H)
    mu = _mm(h, wmu_ref[...]) + bmu_ref[...]               # (2B, K)
    ls = 2.0 * (_mm(h, wls_ref[...]) + bls_ref[...])       # (2B, K)

    # kld_theta = mean_B(kl_gene) + mean_B(kl_peak) = sum(kl_all) / B
    kl_all = -0.5 * (1.0 + ls - mu * mu - jnp.exp(ls))     # (2B, K), f32
    kld_ref[0, 0] = jnp.sum(kl_all) * inv_B

    # theta = softmax(mu, -1)   (eval-mode reparameterize returns mu)
    te = jnp.exp(mu - jnp.max(mu, axis=-1, keepdims=True))
    theta = te * pl.reciprocal(jnp.sum(te, axis=-1, keepdims=True), approx=True)
    theta_d = theta[:B]        # gene documents
    theta_j = theta[B:]        # peak documents

    def decode_loss_sum(theta_bk, emb_ref, w_ref, raw_ref):
        # logits in the lane-dense (K, N) orientation: contract embedding dim.
        logits = lax.dot_general(
            w_ref[...].astype(jnp.bfloat16), emb_ref[...].astype(jnp.bfloat16),
            (((1,), (1,)), ((), ())),
            preferred_element_type=jnp.float32)             # (K, N)
        n = logits.shape[-1]
        e = jnp.exp(logits - jnp.max(logits, axis=-1, keepdims=True))  # (K, N)
        # Softmax denominator over the vocab axis, produced directly as (1, K)
        # (no layout transpose), and folded into theta instead of dividing the
        # full (K, N) matrix.
        z = lax.dot_general(jnp.ones((1, n), jnp.float32), e,
                            (((1,), (1,)), ((), ())),
                            preferred_element_type=jnp.float32)        # (1, K)
        theta_s = theta_bk * pl.reciprocal(z, approx=True)             # (B, K)
        preds = _mm(theta_s, e)                                        # (B, N)
        # metric='nll': contribution -(log(preds) * raw).sum()
        return jnp.sum(jnp.log(preds) * raw_ref[...])

    s = decode_loss_sum(theta_d, rho_ref, w_alpha_ref, gene_raw_ref)
    s = s + decode_loss_sum(theta_j, eta_ref, w_alpha_star_ref, peak_raw_ref)
    recon_ref[0, 0] = -s * inv_B                     # mean over batch rows


# --------------------------------------------------------------------------- #
# Wrapper: one pallas_call, bf16 weights for the MXU (halves weight DMA),
# scalar SMEM outputs.
# --------------------------------------------------------------------------- #
def gnn_etm_forward(params, Gene, Gene_norm, Peak, Peak_norm):
    bf16 = jnp.bfloat16
    recon, kld = pl.pallas_call(
        _gnn_etm_fused_kernel,
        out_shape=(jax.ShapeDtypeStruct((1, 1), jnp.float32),
                   jax.ShapeDtypeStruct((1, 1), jnp.float32)),
        in_specs=[pl.BlockSpec(memory_space=VMEM)] * 20,
        out_specs=(pl.BlockSpec(memory_space=SMEM),
                   pl.BlockSpec(memory_space=SMEM)),
    )(
        Gene_norm.astype(bf16), Peak_norm.astype(bf16), Gene, Peak,
        params["g_w1"].astype(bf16), params["g_b1"],
        params["g_w2"].astype(bf16), params["g_b2"],
        params["p_w1"].astype(bf16), params["p_b1"],
        params["p_w2"].astype(bf16), params["p_b2"],
        params["wmu"].astype(bf16), params["bmu"],
        params["wls"].astype(bf16), params["bls"],
        params["rho"].astype(bf16), params["w_alpha"].astype(bf16),
        params["eta"].astype(bf16), params["w_alpha_star"].astype(bf16),
    )
    return recon[0, 0], kld[0, 0]


# Pure-JAX (f32) reference for correctness checking.
def _reference_forward(params, Gene, Gene_norm, Peak, Peak_norm):
    def enc(x, w1, b1, w2, b2):
        h = jnp.maximum(x @ w1 + b1, 0.0)
        h = jnp.maximum(h @ w2 + b2, 0.0)
        mu = h @ params["wmu"] + params["bmu"]
        ls = 2.0 * (h @ params["wls"] + params["bls"])
        kl = -0.5 * jnp.sum(1.0 + ls - mu ** 2 - jnp.exp(ls), -1)
        return jax.nn.softmax(mu, -1), kl

    th_d, kl_d = enc(Gene_norm, params["g_w1"], params["g_b1"],
                     params["g_w2"], params["g_b2"])
    th_j, kl_j = enc(Peak_norm, params["p_w1"], params["p_b1"],
                     params["p_w2"], params["p_b2"])
    beta_g = jax.nn.softmax(params["rho"] @ params["w_alpha"].T, axis=0).T
    beta_p = jax.nn.softmax(params["eta"] @ params["w_alpha_star"].T, axis=0).T
    lg = -jnp.sum(jnp.log(th_d @ beta_g) * Gene, -1)
    lp = -jnp.sum(jnp.log(th_j @ beta_p) * Peak, -1)
    return jnp.mean(lg + lp), jnp.mean(kl_d) + jnp.mean(kl_j)


if __name__ == "__main__":
    # Small shapes consistent with the module's __init__.
    B = 8                 # batch (documents / cells)
    num_gene = 256
    num_peak = 320
    num_topics = 16
    t_hidden = 64
    t_hidden_peak = 48
    rho_size = 32
    eta_size = 24

    key = jax.random.PRNGKey(0)
    ks = jax.random.split(key, 24)
    s = 0.05   # weight init scale keeps exp(logsigma) well-behaved
    bs = 0.2   # bias init scale (gives mu / logsigma non-trivial magnitudes)

    params = {
        # q_theta_gene: Linear(num_gene, t_hidden) -> relu -> Linear(t_hidden, t_hidden) -> relu
        "g_w1": jax.random.normal(ks[0], (num_gene, t_hidden), jnp.float32) * s,
        "g_b1": jax.random.normal(ks[12], (1, t_hidden), jnp.float32) * bs,
        "g_w2": jax.random.normal(ks[1], (t_hidden, t_hidden), jnp.float32) * s,
        "g_b2": jax.random.normal(ks[13], (1, t_hidden), jnp.float32) * bs,
        # q_theta_peak: Linear(num_peak, t_hidden_peak) -> relu -> Linear(t_hidden_peak, t_hidden) -> relu
        "p_w1": jax.random.normal(ks[2], (num_peak, t_hidden_peak), jnp.float32) * s,
        "p_b1": jax.random.normal(ks[14], (1, t_hidden_peak), jnp.float32) * bs,
        "p_w2": jax.random.normal(ks[3], (t_hidden_peak, t_hidden), jnp.float32) * s,
        "p_b2": jax.random.normal(ks[15], (1, t_hidden), jnp.float32) * bs,
        # shared heads
        "wmu": jax.random.normal(ks[4], (t_hidden, num_topics), jnp.float32) * s,
        "bmu": jax.random.normal(ks[16], (1, num_topics), jnp.float32) * bs,
        "wls": jax.random.normal(ks[5], (t_hidden, num_topics), jnp.float32) * s,
        "bls": jax.random.normal(ks[17], (1, num_topics), jnp.float32) * bs,
        # topic embeddings and alpha projection weights in PyTorch (K, E) layout
        "rho": jax.random.normal(ks[6], (num_gene, rho_size), jnp.float32),
        "eta": jax.random.normal(ks[7], (num_peak, eta_size), jnp.float32),
        "w_alpha": jax.random.normal(ks[8], (num_topics, rho_size), jnp.float32) * s,
        "w_alpha_star": jax.random.normal(ks[9], (num_topics, eta_size), jnp.float32) * s,
    }

    # Non-negative "bag of words" count matrices and normalized versions.
    Gene = jax.random.uniform(ks[10], (B, num_gene), jnp.float32, 0.0, 2.0)
    Peak = jax.random.uniform(ks[11], (B, num_peak), jnp.float32, 0.0, 2.0)
    Gene_norm = Gene / jnp.sum(Gene, axis=-1, keepdims=True)
    Peak_norm = Peak / jnp.sum(Peak, axis=-1, keepdims=True)

    fwd = jax.jit(gnn_etm_forward)
    recon_loss, kld_theta = fwd(params, Gene, Gene_norm, Peak, Peak_norm)
    recon_loss = jax.block_until_ready(recon_loss)
    kld_theta = jax.block_until_ready(kld_theta)

    # Check against pure-JAX f32 reference (tolerance covers bf16 MXU operands).
    ref_recon, ref_kld = _reference_forward(params, Gene, Gene_norm, Peak, Peak_norm)
    assert jnp.allclose(recon_loss, ref_recon, rtol=2e-2, atol=2e-2), (recon_loss, ref_recon)
    assert jnp.allclose(kld_theta, ref_kld, rtol=2e-2, atol=2e-2), (kld_theta, ref_kld)

    print("KERNEL_OK")
</pallas_src>

<mosaic_0001>
module attributes {stable_mosaic.version = 11 : i64} {
  func.func @_gnn_etm_fused_kernel(%arg0: memref<8x256xbf16, #tpu.memory_space<vmem>>, %arg1: memref<8x320xbf16, #tpu.memory_space<vmem>>, %arg2: memref<8x256xf32, #tpu.memory_space<vmem>>, %arg3: memref<8x320xf32, #tpu.memory_space<vmem>>, %arg4: memref<256x64xbf16, #tpu.memory_space<vmem>>, %arg5: memref<1x64xf32, #tpu.memory_space<vmem>>, %arg6: memref<64x64xbf16, #tpu.memory_space<vmem>>, %arg7: memref<1x64xf32, #tpu.memory_space<vmem>>, %arg8: memref<320x48xbf16, #tpu.memory_space<vmem>>, %arg9: memref<1x48xf32, #tpu.memory_space<vmem>>, %arg10: memref<48x64xbf16, #tpu.memory_space<vmem>>, %arg11: memref<1x64xf32, #tpu.memory_space<vmem>>, %arg12: memref<64x16xbf16, #tpu.memory_space<vmem>>, %arg13: memref<1x16xf32, #tpu.memory_space<vmem>>, %arg14: memref<64x16xbf16, #tpu.memory_space<vmem>>, %arg15: memref<1x16xf32, #tpu.memory_space<vmem>>, %arg16: memref<256x32xbf16, #tpu.memory_space<vmem>>, %arg17: memref<16x32xbf16, #tpu.memory_space<vmem>>, %arg18: memref<320x24xbf16, #tpu.memory_space<vmem>>, %arg19: memref<16x24xbf16, #tpu.memory_space<vmem>>, %arg20: memref<1x1xf32, #tpu.memory_space<smem>>, %arg21: memref<1x1xf32, #tpu.memory_space<smem>>) attributes {dimension_semantics = [], scalar_prefetch = 0 : i64, scratch_operands = 0 : i64, tpu.core_type = #tpu.core_type<tc>} {
    %c0 = arith.constant 0 : index
    %c0_0 = arith.constant 0 : index
    %0 = vector.load %arg0[%c0, %c0_0] : memref<8x256xbf16, #tpu.memory_space<vmem>>, vector<8x256xbf16>
    %c0_1 = arith.constant 0 : index
    %c0_2 = arith.constant 0 : index
    %1 = vector.load %arg4[%c0_1, %c0_2] : memref<256x64xbf16, #tpu.memory_space<vmem>>, vector<256x64xbf16>
    %cst = arith.constant dense<0.000000e+00> : vector<8x64xf32>
    %2 = tpu.matmul %0, %1, %cst {dimension_numbers = #tpu.dot_dimension_numbers<[1], [0], [0], [1], [0, 0, 1, 1], [], []>} : vector<8x256xbf16>, vector<256x64xbf16>, vector<8x64xf32> -> vector<8x64xf32>
    %c0_3 = arith.constant 0 : index
    %c0_4 = arith.constant 0 : index
    %3 = vector.load %arg5[%c0_3, %c0_4] : memref<1x64xf32, #tpu.memory_space<vmem>>, vector<1x64xf32>
    %4 = vector.broadcast %3 : vector<1x64xf32> to vector<8x64xf32>
    %5 = arith.addf %2, %4 : vector<8x64xf32>
    %cst_5 = arith.constant 0.000000e+00 : f32
    %6 = vector.broadcast %cst_5 : f32 to vector<8x64xf32>
    %7 = arith.maximumf %5, %6 : vector<8x64xf32>
    %c0_6 = arith.constant 0 : index
    %c0_7 = arith.constant 0 : index
    %8 = vector.load %arg6[%c0_6, %c0_7] : memref<64x64xbf16, #tpu.memory_space<vmem>>, vector<64x64xbf16>
    %9 = arith.truncf %7 : vector<8x64xf32> to vector<8x64xbf16>
    %cst_8 = arith.constant dense<0.000000e+00> : vector<8x64xf32>
    %10 = tpu.matmul %9, %8, %cst_8 {dimension_numbers = #tpu.dot_dimension_numbers<[1], [0], [0], [1], [0, 0, 1, 1], [], []>} : vector<8x64xbf16>, vector<64x64xbf16>, vector<8x64xf32> -> vector<8x64xf32>
    %c0_9 = arith.constant 0 : index
    %c0_10 = arith.constant 0 : index
    %11 = vector.load %arg7[%c0_9, %c0_10] : memref<1x64xf32, #tpu.memory_space<vmem>>, vector<1x64xf32>
    %12 = vector.broadcast %11 : vector<1x64xf32> to vector<8x64xf32>
    %13 = arith.addf %10, %12 : vector<8x64xf32>
    %cst_11 = arith.constant 0.000000e+00 : f32
    %14 = vector.broadcast %cst_11 : f32 to vector<8x64xf32>
    %15 = arith.maximumf %13, %14 : vector<8x64xf32>
    %c0_12 = arith.constant 0 : index
    %c0_13 = arith.constant 0 : index
    %16 = vector.load %arg1[%c0_12, %c0_13] : memref<8x320xbf16, #tpu.memory_space<vmem>>, vector<8x320xbf16>
    %c0_14 = arith.constant 0 : index
    %c0_15 = arith.constant 0 : index
    %17 = vector.load %arg8[%c0_14, %c0_15] : memref<320x48xbf16, #tpu.memory_space<vmem>>, vector<320x48xbf16>
    %cst_16 = arith.constant dense<0.000000e+00> : vector<8x48xf32>
    %18 = tpu.matmul %16, %17, %cst_16 {dimension_numbers = #tpu.dot_dimension_numbers<[1], [0], [0], [1], [0, 0, 1, 1], [], []>} : vector<8x320xbf16>, vector<320x48xbf16>, vector<8x48xf32> -> vector<8x48xf32>
    %c0_17 = arith.constant 0 : index
    %c0_18 = arith.constant 0 : index
    %19 = vector.load %arg9[%c0_17, %c0_18] : memref<1x48xf32, #tpu.memory_space<vmem>>, vector<1x48xf32>
    %20 = vector.broadcast %19 : vector<1x48xf32> to vector<8x48xf32>
    %21 = arith.addf %18, %20 : vector<8x48xf32>
    %cst_19 = arith.constant 0.000000e+00 : f32
    %22 = vector.broadcast %cst_19 : f32 to vector<8x48xf32>
    %23 = arith.maximumf %21, %22 : vector<8x48xf32>
    %c0_20 = arith.constant 0 : index
    %c0_21 = arith.constant 0 : index
    %24 = vector.load %arg10[%c0_20, %c0_21] : memref<48x64xbf16, #tpu.memory_space<vmem>>, vector<48x64xbf16>
    %25 = arith.truncf %23 : vector<8x48xf32> to vector<8x48xbf16>
    %cst_22 = arith.constant dense<0.000000e+00> : vector<8x64xf32>
    %26 = tpu.matmul %25, %24, %cst_22 {dimension_numbers = #tpu.dot_dimension_numbers<[1], [0], [0], [1], [0, 0, 1, 1], [], []>} : vector<8x48xbf16>, vector<48x64xbf16>, vector<8x64xf32> -> vector<8x64xf32>
    %c0_23 = arith.constant 0 : index
    %c0_24 = arith.constant 0 : index
    %27 = vector.load %arg11[%c0_23, %c0_24] : memref<1x64xf32, #tpu.memory_space<vmem>>, vector<1x64xf32>
    %28 = vector.broadcast %27 : vector<1x64xf32> to vector<8x64xf32>
    %29 = arith.addf %26, %28 : vector<8x64xf32>
    %cst_25 = arith.constant 0.000000e+00 : f32
    %30 = vector.broadcast %cst_25 : f32 to vector<8x64xf32>
    %31 = arith.maximumf %29, %30 : vector<8x64xf32>
    %32 = tpu.concatenate %15, %31 in 0 : vector<8x64xf32>, vector<8x64xf32> -> vector<16x64xf32>
    %c0_26 = arith.constant 0 : index
    %c0_27 = arith.constant 0 : index
    %33 = vector.load %arg12[%c0_26, %c0_27] : memref<64x16xbf16, #tpu.memory_space<vmem>>, vector<64x16xbf16>
    %34 = arith.truncf %32 : vector<16x64xf32> to vector<16x64xbf16>
    %cst_28 = arith.constant dense<0.000000e+00> : vector<16x16xf32>
    %35 = tpu.matmul %34, %33, %cst_28 {dimension_numbers = #tpu.dot_dimension_numbers<[1], [0], [0], [1], [0, 0, 1, 1], [], []>} : vector<16x64xbf16>, vector<64x16xbf16>, vector<16x16xf32> -> vector<16x16xf32>
    %c0_29 = arith.constant 0 : index
    %c0_30 = arith.constant 0 : index
    %36 = vector.load %arg13[%c0_29, %c0_30] : memref<1x16xf32, #tpu.memory_space<vmem>>, vector<1x16xf32>
    %37 = vector.broadcast %36 : vector<1x16xf32> to vector<16x16xf32>
    %38 = arith.addf %35, %37 : vector<16x16xf32>
    %c0_31 = arith.constant 0 : index
    %c0_32 = arith.constant 0 : index
    %39 = vector.load %arg14[%c0_31, %c0_32] : memref<64x16xbf16, #tpu.memory_space<vmem>>, vector<64x16xbf16>
    %40 = arith.truncf %32 : vector<16x64xf32> to vector<16x64xbf16>
    %cst_33 = arith.constant dense<0.000000e+00> : vector<16x16xf32>
    %41 = tpu.matmul %40, %39, %cst_33 {dimension_numbers = #tpu.dot_dimension_numbers<[1], [0], [0], [1], [0, 0, 1, 1], [], []>} : vector<16x64xbf16>, vector<64x16xbf16>, vector<16x16xf32> -> vector<16x16xf32>
    %c0_34 = arith.constant 0 : index
    %c0_35 = arith.constant 0 : index
    %42 = vector.load %arg15[%c0_34, %c0_35] : memref<1x16xf32, #tpu.memory_space<vmem>>, vector<1x16xf32>
    %43 = vector.broadcast %42 : vector<1x16xf32> to vector<16x16xf32>
    %44 = arith.addf %41, %43 : vector<16x16xf32>
    %cst_36 = arith.constant 2.000000e+00 : f32
    %45 = vector.broadcast %cst_36 : f32 to vector<16x16xf32>
    %46 = arith.mulf %45, %44 : vector<16x16xf32>
    %cst_37 = arith.constant 1.000000e+00 : f32
    %47 = vector.broadcast %cst_37 : f32 to vector<16x16xf32>
    %48 = arith.addf %47, %46 : vector<16x16xf32>
    %49 = arith.mulf %38, %38 : vector<16x16xf32>
    %50 = arith.subf %48, %49 : vector<16x16xf32>
    %51 = math.exp %46 : vector<16x16xf32>
    %52 = arith.subf %50, %51 : vector<16x16xf32>
    %cst_38 = arith.constant -5.000000e-01 : f32
    %53 = vector.broadcast %cst_38 : f32 to vector<16x16xf32>
    %54 = arith.mulf %53, %52 : vector<16x16xf32>
    %55 = vector.shape_cast %54 : vector<16x16xf32> to vector<1x16x16xf32>
    %cst_39 = arith.constant dense<0.000000e+00> : vector<1xf32>
    %56 = vector.multi_reduction <add>, %55, %cst_39 [1, 2] : vector<1x16x16xf32> to vector<1xf32>
    %57 = vector.shape_cast %56 : vector<1xf32> to vector<1x1x1xf32>
    %58 = vector.extract %57[0, 0, 0] : f32 from vector<1x1x1xf32>
    %cst_40 = arith.constant 1.250000e-01 : f32
    %59 = arith.mulf %58, %cst_40 : f32
    %c0_41 = arith.constant 0 : index
    %c0_42 = arith.constant 0 : index
    %60 = memref.load %arg21[%c0_41, %c0_42] : memref<1x1xf32, #tpu.memory_space<smem>>
    memref.store %59, %arg21[%c0_41, %c0_42] : memref<1x1xf32, #tpu.memory_space<smem>>
    %cst_43 = arith.constant dense<0xFF800000> : vector<16xf32>
    %61 = vector.multi_reduction <maximumf>, %38, %cst_43 [1] : vector<16x16xf32> to vector<16xf32>
    %62 = vector.shape_cast %61 : vector<16xf32> to vector<16x1xf32>
    %63 = vector.broadcast %62 : vector<16x1xf32> to vector<16x16xf32>
    %64 = arith.subf %38, %63 : vector<16x16xf32>
    %65 = math.exp %64 : vector<16x16xf32>
    %cst_44 = arith.constant dense<0.000000e+00> : vector<16xf32>
    %66 = vector.multi_reduction <add>, %65, %cst_44 [1] : vector<16x16xf32> to vector<16xf32>
    %67 = vector.shape_cast %66 : vector<16xf32> to vector<16x1xf32>
    %68 = tpu.reciprocal %67 {approx = true} : vector<16x1xf32> -> vector<16x1xf32>
    %69 = vector.broadcast %68 : vector<16x1xf32> to vector<16x16xf32>
    %70 = arith.mulf %65, %69 : vector<16x16xf32>
    %71 = vector.extract_strided_slice %70 {offsets = [0, 0], sizes = [8, 16], strides = [1, 1]} : vector<16x16xf32> to vector<8x16xf32>
    %72 = vector.extract_strided_slice %70 {offsets = [8, 0], sizes = [8, 16], strides = [1, 1]} : vector<16x16xf32> to vector<8x16xf32>
    %c0_45 = arith.constant 0 : index
    %c0_46 = arith.constant 0 : index
    %73 = vector.load %arg17[%c0_45, %c0_46] : memref<16x32xbf16, #tpu.memory_space<vmem>>, vector<16x32xbf16>
    %c0_47 = arith.constant 0 : index
    %c0_48 = arith.constant 0 : index
    %74 = vector.load %arg16[%c0_47, %c0_48] : memref<256x32xbf16, #tpu.memory_space<vmem>>, vector<256x32xbf16>
    %cst_49 = arith.constant dense<0.000000e+00> : vector<16x256xf32>
    %75 = tpu.matmul %73, %74, %cst_49 {dimension_numbers = #tpu.dot_dimension_numbers<[1], [1], [0], [0], [0, 0, 1, 0], [], []>} : vector<16x32xbf16>, vector<256x32xbf16>, vector<16x256xf32> -> vector<16x256xf32>
    %cst_50 = arith.constant dense<0xFF800000> : vector<16xf32>
    %76 = vector.multi_reduction <maximumf>, %75, %cst_50 [1] : vector<16x256xf32> to vector<16xf32>
    %77 = vector.shape_cast %76 : vector<16xf32> to vector<16x1xf32>
    %78 = vector.broadcast %77 : vector<16x1xf32> to vector<16x256xf32>
    %79 = arith.subf %75, %78 : vector<16x256xf32>
    %80 = math.exp %79 : vector<16x256xf32>
    %cst_51 = arith.constant 1.000000e+00 : f32
    %81 = vector.broadcast %cst_51 : f32 to vector<1x256xf32>
    %cst_52 = arith.constant dense<0.000000e+00> : vector<1x16xf32>
    %82 = tpu.matmul %81, %80, %cst_52 {dimension_numbers = #tpu.dot_dimension_numbers<[1], [1], [0], [0], [0, 0, 1, 0], [], []>} : vector<1x256xf32>, vector<16x256xf32>, vector<1x16xf32> -> vector<1x16xf32>
    %83 = tpu.reciprocal %82 {approx = true} : vector<1x16xf32> -> vector<1x16xf32>
    %84 = vector.broadcast %83 : vector<1x16xf32> to vector<8x16xf32>
    %85 = arith.mulf %71, %84 : vector<8x16xf32>
    %86 = arith.truncf %85 : vector<8x16xf32> to vector<8x16xbf16>
    %87 = arith.truncf %80 : vector<16x256xf32> to vector<16x256xbf16>
    %cst_53 = arith.constant dense<0.000000e+00> : vector<8x256xf32>
    %88 = tpu.matmul %86, %87, %cst_53 {dimension_numbers = #tpu.dot_dimension_numbers<[1], [0], [0], [1], [0, 0, 1, 1], [], []>} : vector<8x16xbf16>, vector<16x256xbf16>, vector<8x256xf32> -> vector<8x256xf32>
    %89 = math.log %88 : vector<8x256xf32>
    %c0_54 = arith.constant 0 : index
    %c0_55 = arith.constant 0 : index
    %90 = vector.load %arg2[%c0_54, %c0_55] : memref<8x256xf32, #tpu.memory_space<vmem>>, vector<8x256xf32>
    %91 = arith.mulf %89, %90 : vector<8x256xf32>
    %92 = vector.shape_cast %91 : vector<8x256xf32> to vector<1x8x256xf32>
    %cst_56 = arith.constant dense<0.000000e+00> : vector<1xf32>
    %93 = vector.multi_reduction <add>, %92, %cst_56 [1, 2] : vector<1x8x256xf32> to vector<1xf32>
    %94 = vector.shape_cast %93 : vector<1xf32> to vector<1x1x1xf32>
    %95 = vector.extract %94[0, 0, 0] : f32 from vector<1x1x1xf32>
    %c0_57 = arith.constant 0 : index
    %c0_58 = arith.constant 0 : index
    %96 = vector.load %arg19[%c0_57, %c0_58] : memref<16x24xbf16, #tpu.memory_space<vmem>>, vector<16x24xbf16>
    %c0_59 = arith.constant 0 : index
    %c0_60 = arith.constant 0 : index
    %97 = vector.load %arg18[%c0_59, %c0_60] : memref<320x24xbf16, #tpu.memory_space<vmem>>, vector<320x24xbf16>
    %cst_61 = arith.constant dense<0.000000e+00> : vector<16x320xf32>
    %98 = tpu.matmul %96, %97, %cst_61 {dimension_numbers = #tpu.dot_dimension_numbers<[1], [1], [0], [0], [0, 0, 1, 0], [], []>} : vector<16x24xbf16>, vector<320x24xbf16>, vector<16x320xf32> -> vector<16x320xf32>
    %cst_62 = arith.constant dense<0xFF800000> : vector<16xf32>
    %99 = vector.multi_reduction <maximumf>, %98, %cst_62 [1] : vector<16x320xf32> to vector<16xf32>
    %100 = vector.shape_cast %99 : vector<16xf32> to vector<16x1xf32>
    %101 = vector.broadcast %100 : vector<16x1xf32> to vector<16x320xf32>
    %102 = arith.subf %98, %101 : vector<16x320xf32>
    %103 = math.exp %102 : vector<16x320xf32>
    %cst_63 = arith.constant 1.000000e+00 : f32
    %104 = vector.broadcast %cst_63 : f32 to vector<1x320xf32>
    %cst_64 = arith.constant dense<0.000000e+00> : vector<1x16xf32>
    %105 = tpu.matmul %104, %103, %cst_64 {dimension_numbers = #tpu.dot_dimension_numbers<[1], [1], [0], [0], [0, 0, 1, 0], [], []>} : vector<1x320xf32>, vector<16x320xf32>, vector<1x16xf32> -> vector<1x16xf32>
    %106 = tpu.reciprocal %105 {approx = true} : vector<1x16xf32> -> vector<1x16xf32>
    %107 = vector.broadcast %106 : vector<1x16xf32> to vector<8x16xf32>
    %108 = arith.mulf %72, %107 : vector<8x16xf32>
    %109 = arith.truncf %108 : vector<8x16xf32> to vector<8x16xbf16>
    %110 = arith.truncf %103 : vector<16x320xf32> to vector<16x320xbf16>
    %cst_65 = arith.constant dense<0.000000e+00> : vector<8x320xf32>
    %111 = tpu.matmul %109, %110, %cst_65 {dimension_numbers = #tpu.dot_dimension_numbers<[1], [0], [0], [1], [0, 0, 1, 1], [], []>} : vector<8x16xbf16>, vector<16x320xbf16>, vector<8x320xf32> -> vector<8x320xf32>
    %112 = math.log %111 : vector<8x320xf32>
    %c0_66 = arith.constant 0 : index
    %c0_67 = arith.constant 0 : index
    %113 = vector.load %arg3[%c0_66, %c0_67] : memref<8x320xf32, #tpu.memory_space<vmem>>, vector<8x320xf32>
    %114 = arith.mulf %112, %113 : vector<8x320xf32>
    %115 = vector.shape_cast %114 : vector<8x320xf32> to vector<1x8x320xf32>
    %cst_68 = arith.constant dense<0.000000e+00> : vector<1xf32>
    %116 = vector.multi_reduction <add>, %115, %cst_68 [1, 2] : vector<1x8x320xf32> to vector<1xf32>
    %117 = vector.shape_cast %116 : vector<1xf32> to vector<1x1x1xf32>
    %118 = vector.extract %117[0, 0, 0] : f32 from vector<1x1x1xf32>
    %119 = arith.addf %95, %118 : f32
    %cst_69 = arith.constant 0.000000e+00 : f32
    %120 = arith.subf %cst_69, %119 : f32
    %cst_70 = arith.constant 1.250000e-01 : f32
    %121 = arith.mulf %120, %cst_70 : f32
    %c0_71 = arith.constant 0 : index
    %c0_72 = arith.constant 0 : index
    %122 = memref.load %arg20[%c0_71, %c0_72] : memref<1x1xf32, #tpu.memory_space<smem>>
    memref.store %121, %arg20[%c0_71, %c0_72] : memref<1x1xf32, #tpu.memory_space<smem>>
    return
  }
}

</mosaic_0001>

<bundles_post_ra>
// kernel: gnn_etm_forward.1
= control target key start
LH: loop header
LB: loop body
LE: loop exit
PB: predicated region body
PF: predicated region fallthrough
CT: control target
= control target key end

     0   :  { %s2546_s0 = inlined_call_operand.vmem [shape: bf16[8,256], index: 0, kind: input, shape index: {}]   ;;  %s2547_s1 = inlined_call_operand.vmem [shape: bf16[8,320], index: 1, kind: input, shape index: {}]   ;;  %s2548_s2 = inlined_call_operand.vmem [shape: f32[8,256], index: 2, kind: input, shape index: {}]   ;;  %s2549_s3 = inlined_call_operand.vmem [shape: f32[8,320], index: 3, kind: input, shape index: {}]   ;;  %s2550_s4 = inlined_call_operand.vmem [shape: bf16[256,64], index: 4, kind: input, shape index: {}]   ;;  %s2551_s5 = inlined_call_operand.vmem [shape: f32[1,64], index: 5, kind: input, shape index: {}]   ;;  %s2552_s6 = inlined_call_operand.vmem [shape: bf16[64,64], index: 6, kind: input, shape index: {}]   ;;  %s2553_s7 = inlined_call_operand.vmem [shape: f32[1,64], index: 7, kind: input, shape index: {}]   ;;  %s2554_s8 = inlined_call_operand.vmem [shape: bf16[320,48], index: 8, kind: input, shape index: {}]   ;;  %s2555_s9 = inlined_call_operand.vmem [shape: f32[1,48], index: 9, kind: input, shape index: {}]   ;;  %s2556_s10 = inlined_call_operand.vmem [shape: bf16[48,64], index: 10, kind: input, shape index: {}]   ;;  %s2557_s11 = inlined_call_operand.vmem [shape: f32[1,64], index: 11, kind: input, shape index: {}]   ;;  %s2558_s12 = inlined_call_operand.vmem [shape: bf16[64,16], index: 12, kind: input, shape index: {}]   ;;  %s2559_s13 = inlined_call_operand.vmem [shape: f32[1,16], index: 13, kind: input, shape index: {}]   ;;  %s2560_s14 = inlined_call_operand.vmem [shape: bf16[64,16], index: 14, kind: input, shape index: {}]   ;;  %s2561_s15 = inlined_call_operand.vmem [shape: f32[1,16], index: 15, kind: input, shape index: {}]   ;;  %s2562_s16 = inlined_call_operand.vmem [shape: bf16[256,32], index: 16, kind: input, shape index: {}]   ;;  %s2563_s17 = inlined_call_operand.vmem [shape: bf16[16,32], index: 17, kind: input, shape index: {}]   ;;  %s2564_s18 = inlined_call_operand.vmem [shape: bf16[320,24], index: 18, kind: input, shape index: {}]   ;;  %s2565_s19 = inlined_call_operand.vmem [shape: bf16[16,24], index: 19, kind: input, shape index: {}]   ;;  %s2566_s20 = inlined_call_operand.hbm [shape: f32[1,1], index: 20, kind: output, shape index: {0}]   ;;  %s2567_s21 = inlined_call_operand.hbm [shape: f32[1,1], index: 21, kind: output, shape index: {1}]  }
   0x1   :  { %2572 = sst [smem:[#allocation8_spill]] %s2546_s0 }
   0x2   :  { %2573 = sst [smem:[#allocation9_spill]] %s2547_s1 }
   0x3   :  { %2574 = sst [smem:[#allocation10_spill]] %s2548_s2 }
   0x4   :  { %2575 = sst [smem:[#allocation11_spill]] %s2549_s3 }
   0x5   :  { %2576 = sst [smem:[#allocation12_spill]] %s2550_s4 }
   0x6   :  { %2577 = sst [smem:[#allocation13_spill]] %s2551_s5 }
   0x7   :  { %27 = vsyncpa [#allocation3], 0  ;;  %s2578_s26 = sld [smem:[#allocation12_spill]]  ;;  %v1876_v4 = vld [vmem:[%s2552_s6 + $0x18] sm:$0xff]  ;;  %v1875_v8 = vld [vmem:[%s2552_s6 + $0x10] sm:$0xff] }
   0x8   :  { %v1884_v7 = vld [vmem:[%s2554_s8 + $0x38] sm:$0xff]  ;;  %282 = vmatpush.bf16.msra.mxu2 %v1876_v4  ;;  %v1883_v10 = vld [vmem:[%s2554_s8 + $0x30] sm:$0xff]  ;;  %v1874_v12 = vld [vmem:[%s2552_s6 + $0x8] sm:$0xff] }
   0x9   :  { %471 = vmatpush.bf16.msra.mxu3 %v1884_v7 }
   0xc   :  { %283 = vmatpush.bf16.msra.mxu2 %v1875_v8 }
   0xd   :  { %v1864_v0 = vld [vmem:[%s2578_s26 + $0x38] sm:$0xff]  ;;  %v1863_v2 = vld [vmem:[%s2578_s26 + $0x30] sm:$0xff]  ;;  %v1862_v5 = vld [vmem:[%s2578_s26 + $0x28] sm:$0xff] }
   0xe   :  { %v1872_v1 = vld [vmem:[%s2578_s26 + $0x78] sm:$0xff]  ;;  %210 = vmatpush.bf16.msra.mxu0 %v1864_v0  ;;  %v1871_v3 = vld [vmem:[%s2578_s26 + $0x70] sm:$0xff]  ;;  %v1870_v6 = vld [vmem:[%s2578_s26 + $0x68] sm:$0xff] }
   0xf   :  { %223 = vmatpush.bf16.msra.mxu1 %v1872_v1  ;;  %v1861_v9 = vld [vmem:[%s2578_s26 + $0x20] sm:$0xff] }
  0x10   :  { %v1869_v11 = vld [vmem:[%s2578_s26 + $0x60] sm:$0xff] }
  0x12   :  { %211 = vmatpush.bf16.msra.mxu0 %v1863_v2 }
  0x13   :  { %224 = vmatpush.bf16.msra.mxu1 %v1871_v3 }
  0x16   :  { %212 = vmatpush.bf16.msra.mxu0 %v1862_v5 }
  0x17   :  { %225 = vmatpush.bf16.msra.mxu1 %v1870_v6 }
  0x18   :  { %28 = vsyncpa [#allocation5], 0  ;;  %472 = vmatpush.bf16.msra.mxu3 %v1883_v10  ;;  %v1882_v13 = vld [vmem:[%s2554_s8 + $0x28] sm:$0xff]  ;;  %v1860_v14 = vld [vmem:[%s2578_s26 + $0x18] sm:$0xff]  ;;  %284 = vmatpush.bf16.msra.mxu2 %v1874_v12  ;;  %s2579_s4 = sld [smem:[#allocation8_spill]]  ;;  %vm274_vm0 = vcmask 523264  }
  0x19   :  { %v1868_v15 = vld [vmem:[%s2578_s26 + $0x58] sm:$0xff]  ;;  %v1873_v16 = vld [vmem:[%s2552_s6] sm:$0xff]  ;;  %v1859_v19 = vld [vmem:[%s2578_s26 + $0x10] sm:$0xff]  ;;  %s2581_s3 = sld [smem:[#allocation13_spill]]  ;;  %vm835_vm1 = vcmask 261120   ;;  %vm540_vm2 = vcmask 392192  }
  0x1a   :  { %213 = vmatpush.bf16.msra.mxu0 %v1861_v9  ;;  %v1892_v17 = vld [vmem:[%s2554_s8 + $0x78] sm:$0xff]  ;;  %v1881_v18 = vld [vmem:[%s2554_s8 + $0x20] sm:$0xff]  ;;  %v1867_v20 = vld [vmem:[%s2578_s26 + $0x50] sm:$0xff]  ;;  %vm678_vm3 = vcmask 130048   ;;  %vm1173_vm4 = vcmask 195584   ;;  %s2582_s2 = sld [smem:[#allocation10_spill]] }
  0x1b   :  { %226 = vmatpush.bf16.msra.mxu1 %v1869_v11  ;;  %v1891_v21 = vld [vmem:[%s2554_s8 + $0x70] sm:$0xff]  ;;  %v1858_v22 = vld [vmem:[%s2578_s26 + $0x8] sm:$0xff]  ;;  %v1857_v27 = vld [vmem:[%s2578_s26] sm:$0xff]  ;;  %s1468_s0 = sshll.u32 %s2567_s21, 4  ;;  %s2037_s23 = smov [#allocation2]   ;;  %s1469_s0 = int_to_ptr.hbm [resolvable:$true] %s1468_s0 }
  0x1c   :  { %473 = vmatpush.bf16.msra.mxu3 %v1882_v13  ;;  %285 = vmatpush.bf16.msra.mxu2 %v1873_v16  ;;  %v1866_v23 = vld [vmem:[%s2578_s26 + $0x48] sm:$0xff]  ;;  %v1865_v28 = vld [vmem:[%s2578_s26 + $0x40] sm:$0xff]  ;;  %v1880_v31 = vld [vmem:[%s2554_s8 + $0x18] sm:$0xff]  ;;  %s2580_s26 = sld [smem:[#allocation9_spill]] }
  0x1d   :  { %v1890_v32 = vld [vmem:[%s2554_s8 + $0x68] sm:$0xff]  ;;  %v1879_v33 = vld [vmem:[%s2554_s8 + $0x10] sm:$0xff]  ;;  %v1889_v34 = vld [vmem:[%s2554_s8 + $0x60] sm:$0xff] }
  0x1e   :  { %214 = vmatpush.bf16.msra.mxu0 %v1860_v14  ;;  %v70_v24 = vld [vmem:[%s2579_s4] sm:$0xff]  ;;  %v1878_v35 = vld [vmem:[%s2554_s8 + $0x8] sm:$0xff]  ;;  %v1888_v36 = vld [vmem:[%s2554_s8 + $0x58] sm:$0xff] }
  0x1f   :  { %227 = vmatpush.bf16.msra.mxu1 %v1868_v15  ;;  %v108_v25 = vunpack.c.l.b16 %v70_v24  ;;  %v109_v26 = vunpack.c.h.b16 %v70_v24  ;;  %v1896_v37 = vld [vmem:[%s2554_s8 + $0x98] sm:$0xff]  ;;  %v1877_v38 = vld [vmem:[%s2554_s8] sm:$0xff]  ;;  %v1887_v39 = vld [vmem:[%s2554_s8 + $0x50] sm:$0xff] }
  0x20   :  { %484 = vmatpush.bf16.msrb.mxu2 %v1892_v17  ;;  %474 = vmatpush.bf16.msra.mxu3 %v1881_v18  ;;  %v1895_v40 = vld [vmem:[%s2554_s8 + $0x90] sm:$0xff]  ;;  %v1886_v44 = vld [vmem:[%s2554_s8 + $0x48] sm:$0xff]  ;;  %v1885_v46 = vld [vmem:[%s2554_s8 + $0x40] sm:$0xff] }
  0x21   :  { %v110_v29 = vpack.c.b16 %v108_v25, %v108_v25  ;;  %v111_v30 = vpack.c.b16 %v109_v26, %v109_v26  ;;  %v1894_v45 = vld [vmem:[%s2554_s8 + $0x88] sm:$0xff]  ;;  %v1893_v47 = vld [vmem:[%s2554_s8 + $0x80] sm:$0xff]  ;;  %v1899_v51 = vld [vmem:[%s2556_s10 + $0x10] sm:$0xff] }
  0x22   :  { %215 = vmatpush.bf16.msra.mxu0 %v1859_v19  ;;  %v292_v41 = vld [vmem:[%s2580_s26] sm:$0xff]  ;;  %v293_v48 = vld [vmem:[%s2580_s26 + $0x8] sm:$0xf]  ;;  %v1916_v54 = vld [vmem:[%s2562_s16 + $0x38] sm:$0xff] }
  0x23   :  { %228 = vmatpush.bf16.msra.mxu1 %v1867_v20  ;;  %v340_v42 = vunpack.c.l.b16 %v292_v41  ;;  %v342_v49 = vunpack.c.l.b16 %v293_v48  ;;  %v1898_v52 = vld [vmem:[%s2556_s10 + $0x8] sm:$0xff]  ;;  %v1955_v53 = vld [vmem:[%s2581_s3] ss:$0 sm:$0xff]  ;;  %v861_v59 = vsel %vm835_vm1, %v1916_v54, 0  ;;  %v1924_v61 = vld [vmem:[%s2562_s16 + $0x78] sm:$0xff]  ;;  %v341_v8 = vunpack.c.h.b16 %v292_v41 }
  0x24   :  { %485 = vmatpush.bf16.msrb.mxu2 %v1891_v21  ;;  %475 = vmatpush.bf16.msra.mxu3 %v1880_v31  ;;  %v1897_v55 = vld [vmem:[%s2556_s10] sm:$0xff]  ;;  %v1915_v63 = vld [vmem:[%s2562_s16 + $0x30] sm:$0xff]  ;;  %v885_v1 = vsel %vm835_vm1, %v1924_v61, 0  ;;  %v1914_v6 = vld [vmem:[%s2562_s16 + $0x28] sm:$0xff] }
  0x25   :  { %v343_v43 = vpack.c.b16 %v340_v42, %v340_v42  ;;  %v345_v50 = vpack.c.b16 %v342_v49, %v342_v49  ;;  %v858_v4 = vsel %vm835_vm1, %v1915_v63, 0  ;;  %v1923_v5 = vld [vmem:[%s2562_s16 + $0x70] sm:$0xff]  ;;  %v855_v9 = vsel %vm835_vm1, %v1914_v6, 0  ;;  %v1922_v10 = vld [vmem:[%s2562_s16 + $0x68] sm:$0xff]  ;;  %v1921_v13 = vld [vmem:[%s2562_s16 + $0x60] sm:$0xff] }
  0x26   :  { %216 = vmatpush.bf16.msra.mxu0 %v1858_v22  ;;  %v882_v7 = vsel %vm835_vm1, %v1923_v5, 0  ;;  %v344_v11 = vpack.c.b16 %v341_v8, %v341_v8  ;;  %v879_v12 = vsel %vm835_vm1, %v1922_v10, 0  ;;  %v876_v14 = vsel %vm835_vm1, %v1921_v13, 0  ;;  %v1913_v15 = vld [vmem:[%s2562_s16 + $0x20] sm:$0xff]  ;;  %v1920_v17 = vld [vmem:[%s2562_s16 + $0x58] sm:$0xff]  ;;  %v1919_v21 = vld [vmem:[%s2562_s16 + $0x50] sm:$0xff] }
  0x27   :  { %229 = vmatpush.bf16.msra.mxu1 %v1866_v23  ;;  %v852_v16 = vsel %vm835_vm1, %v1913_v15, 0  ;;  %v873_v18 = vsel %vm835_vm1, %v1920_v17, 0  ;;  %v1912_v20 = vld [vmem:[%s2562_s16 + $0x18] sm:$0xff]  ;;  %v870_v24 = vsel %vm835_vm1, %v1919_v21, 0  ;;  %v1911_v26 = vld [vmem:[%s2562_s16 + $0x10] sm:$0xff]  ;;  %v1910_v31 = vld [vmem:[%s2562_s16 + $0x8] sm:$0xff] }
  0x28   :  { %486 = vmatpush.bf16.msrb.mxu2 %v1890_v32  ;;  %476 = vmatpush.bf16.msra.mxu3 %v1879_v33  ;;  %v849_v22 = vsel %vm835_vm1, %v1912_v20, 0  ;;  %v843_v32 = vsel %vm835_vm1, %v1910_v31, 0  ;;  %v1917_v33 = vld [vmem:[%s2562_s16 + $0x40] sm:$0xff]  ;;  %v1903_v41 = vld [vmem:[%s2558_s12 + $0x18] sm:$0xff] }
  0x29   :  { %v1907_v42 = vld [vmem:[%s2560_s14 + $0x18] sm:$0xff]  ;;  %v1900_v54 = vld [vmem:[%s2558_s12] sm:$0xff] }
  0x2a   :  { %217 = vmatpush.bf16.msra.mxu0 %v1857_v27  ;;  %v846_v27 = vsel %vm835_vm1, %v1911_v26, 0  ;;  %v1933_v31 = vld [vmem:[%s2564_s18 + $0x38] sm:$0xff] }
  0x2b   :  { %230 = vmatpush.bf16.msra.mxu1 %v1865_v28  ;;  %v1918_v28 = vld [vmem:[%s2562_s16 + $0x48] sm:$0xff] }
  0x2c   :  { %487 = vmatpush.bf16.msrb.mxu2 %v1889_v34  ;;  %477 = vmatpush.bf16.msra.mxu3 %v1878_v35  ;;  %v864_v34 = vsel %vm835_vm1, %v1917_v33, 0  ;;  %v1909_v35 = vld [vmem:[%s2562_s16] sm:$0xff]  ;;  %v1199_v33 = vsel %vm1173_vm4, %v1933_v31, 0  ;;  %s2036_s16 = smov [#allocation4]  }
  0x2d   :  { %218 = vmatmul.bf16.vlgmr.msra.gmra.mxu0 %v110_v29 }
  0x2e   :  { %231 = vmatmul.bf16.vlgmr.msra.gmra.mxu1 %v111_v30  ;;  %501 = vmatpush.bf16.msrb.mxu0 %v1896_v37  ;;  %v867_v30 = vsel %vm835_vm1, %v1918_v28, 0  ;;  %v1908_v37 = vld [vmem:[%s2563_s17] sm:$0xff] }
  0x2f   :  { %549 = vmatpush.bf16.msrb.mxu1 %v1899_v51 }
  0x30   :  { %488 = vmatpush.bf16.msrb.mxu2 %v1888_v36  ;;  %478 = vmatpush.bf16.msra.mxu3 %v1877_v38  ;;  %v840_v36 = vsel %vm835_vm1, %v1909_v35, 0  ;;  %v1932_v35 = vld [vmem:[%s2564_s18 + $0x30] sm:$0xff] }
  0x32   :  { %502 = vmatpush.bf16.msrb.mxu0 %v1895_v40  ;;  %v1957_v40 = vld [vmem:[%s2555_s9] ss:$0 sm:$0xff]  ;;  %s1459_s9 = sshll.u32 %s2566_s20, 4  ;;  %s1460_s9 = int_to_ptr.hbm [resolvable:$true] %s1459_s9 }
  0x33   :  { %479 = vmatmul.bf16.vlgmr.msra.gmra.mxu3 %v343_v43  ;;  %550 = vmatpush.bf16.msrb.mxu1 %v1898_v52  ;;  %v1902_v43 = vld [vmem:[%s2558_s12 + $0x10] sm:$0xff]  ;;  %v1901_v52 = vld [vmem:[%s2558_s12 + $0x8] sm:$0xff] }
  0x34   :  { %489 = vmatpush.bf16.msrb.mxu2 %v1887_v39  ;;  %602 = vmatpush.bf16.msrb.mxu3 %v1903_v41 }
  0x36   :  { %503 = vmatpush.bf16.msrb.mxu0 %v1894_v45 }
  0x37   :  { %551 = vmatpush.bf16.msrb.mxu1 %v1897_v55  ;;  %v1904_v55 = vld [vmem:[%s2560_s14] sm:$0xff] }
  0x38   :  { %490 = vmatpush.bf16.msrb.mxu2 %v1886_v44  ;;  %v1906_v44 = vld [vmem:[%s2560_s14 + $0x10] sm:$0xff]  ;;  %603 = vmatpush.bf16.msrb.mxu3 %v1902_v43  ;;  %v1939_v43 = vld [vmem:[%s2564_s18 + $0x68] sm:$0xff] }
  0x3a   :  { %504 = vmatpush.bf16.msrb.mxu0 %v1893_v47 }
  0x3b   :  { %887 = vmatpush.bf16.xpose.msra.mxu1 %v861_v59 }
  0x3c   :  { %491 = vmatpush.bf16.msrb.mxu2 %v1885_v46  ;;  %604 = vmatpush.bf16.msrb.mxu3 %v1901_v52 }
  0x3d   :  { %1644 = vmatmul.msk.bf16.vlgmr.msrb.gmra.mxu0 %vm274_vm0, %v345_v50 }
  0x3e   :  { %652 = vmatpush.bf16.msra.mxu0 %v1907_v42  ;;  %v1931_v42 = vld [vmem:[%s2564_s18 + $0x28] sm:$0xff] }
  0x40   :  { %605 = vmatpush.bf16.msrb.mxu3 %v1900_v54  ;;  %v1938_v54 = vld [vmem:[%s2564_s18 + $0x60] sm:$0xff] }
  0x42   :  { %653 = vmatpush.bf16.msra.mxu0 %v1906_v44 }
  0x43   :  { %888 = vmatpush.bf16.xpose.msra.mxu1 %v858_v4 }
  0x4b   :  { %889 = vmatpush.bf16.xpose.msra.mxu1 %v855_v9 }
  0x53   :  { %890 = vmatpush.bf16.xpose.msra.mxu1 %v852_v16 }
  0x5b   :  { %891 = vmatpush.bf16.xpose.msra.mxu1 %v849_v22 }
  0x63   :  { %892 = vmatpush.bf16.xpose.msra.mxu1 %v846_v27 }
  0x6b   :  { %893 = vmatpush.bf16.xpose.msra.mxu1 %v843_v32  ;;  %v1941_v32 = vld [vmem:[%s2564_s18 + $0x78] sm:$0xff] }
  0x73   :  { %894 = vmatpush.bf16.xpose.msra.mxu1 %v840_v36  ;;  %v1940_v36 = vld [vmem:[%s2564_s18 + $0x70] sm:$0xff] }
  0xaa   :  { %v219_v56 = vpop.f32.mrf.mxu0 }
  0xab   :  { %v232_v57 = vpop.f32.mrf.mxu1  ;;  %v220_v58 = vadd.f32 %v1955_v53, %v219_v56  ;;  %v1905_v53 = vld [vmem:[%s2560_s14 + $0x8] sm:$0xff]  ;;  %v1956_v56 = vld [vmem:[%s2553_s7] ss:$0 sm:$0xff]  ;;  %s2583_s7 = sld [smem:[#allocation11_spill]] }
  0xac   :  { %654 = vmatpush.bf16.msra.mxu0 %v1905_v53  ;;  %v1930_v53 = vld [vmem:[%s2564_s18 + $0x20] sm:$0xff] }
  0xad   :  { %v233_v60 = vadd.f32 %v232_v57, %v220_v58  ;;  %v1958_v57 = vld [vmem:[%s2557_s11] ss:$0 sm:$0xff] }
  0xaf   :  { %v236_v62 = vmax.f32 %v233_v60, 0.0 }
  0xb0   :  { %655 = vmatpush.bf16.msra.mxu0 %v1904_v55  ;;  %v1945_v55 = vld [vmem:[%s2564_s18 + $0x98] sm:$0xff] }
  0xb1   :  { %v245_v0 = vpack.c.bf16 %v236_v62, %v236_v62 }
  0xb2   :  { %v221_v2 = vpop.f32.mrf.mxu0 }
  0xb3   :  { %v234_v3 = vpop.f32.mrf.mxu1  ;;  %1563 = vmatmul.msk.bf16.vlgmr.msra.gmra.mxu2 %vm274_vm0, %v245_v0 }
  0xb4   :  { %901 = vmatpush.bf16.xpose.msra.mxu2 %v885_v1 }
  0xb6   :  { %v480_v19 = vpop.f32.mrf.mxu3 }
  0xb7   :  { %v481_v45 = vadd.f32 %v1957_v40, %v480_v19 }
  0xba   :  { %v506_v23 = vpop.f32.mrf.mxu0 }
  0xbc   :  { %902 = vmatpush.bf16.xpose.msra.mxu2 %v882_v7  ;;  %v1960_v7 = vld [vmem:[%s2559_s13] ss:$0 sm:$0xff] }
  0xbe   :  { %v482_v25 = vpop.f32.mrf.mxu3 }
  0xc2   :  { %v508_v29 = vpop.f32.mrf.mxu0 }
  0xc3   :  { %492 = vmatmul.bf16.vlgmr.msrb.gmra.mxu2 %v344_v11  ;;  %v2035_v29 = vmov 1.0  }
  0xc4   :  { %903 = vmatpush.bf16.xpose.msra.mxu2 %v879_v12 }
  0xcc   :  { %904 = vmatpush.bf16.xpose.msra.mxu2 %v876_v14 }
  0xd4   :  { %905 = vmatpush.bf16.xpose.msra.mxu2 %v873_v18 }
  0xdc   :  { %906 = vmatpush.bf16.xpose.msra.mxu2 %v870_v24 }
  0xe4   :  { %907 = vmatpush.bf16.xpose.msra.mxu2 %v867_v30 }
  0xec   :  { %908 = vmatpush.bf16.xpose.msra.mxu2 %v864_v34  ;;  %v1223_v34 = vsel %vm1173_vm4, %v1941_v32, 0 }
  0xf3   :  { %1761 = vmatmul.msk.bf16.vlgmr.msra.gmra.mxu2 %vm835_vm1, %v1908_v37 }
 0x136   :  { %v287_v38 = vpop.f32.mrf.mxu2 }
 0x137   :  { %v288_v58 = vadd.f32 %v1956_v56, %v287_v38  ;;  %v1220_v38 = vsel %vm1173_vm4, %v1940_v36, 0  ;;  %v1190_v56 = vsel %vm1173_vm4, %v1930_v53, 0 }
 0x139   :  { %v291_v61 = vmax.f32 %v288_v58, 0.0  ;;  %v1235_v58 = vsel %vm1173_vm4, %v1945_v55, 0 }
 0x13e   :  { %v289_v39 = vpop.f32.mrf.mxu2 }
 0x146   :  { %v493_v46 = vpop.f32.mrf.mxu2 }
 0x147   :  { %v494_v47 = vadd.f32 %v493_v46, %v481_v45  ;;  %v1193_v46 = vsel %vm1173_vm4, %v1931_v42, 0 }
 0x149   :  { %v507_v48 = vadd.f32 %v506_v23, %v494_v47  ;;  %v1217_v47 = vsel %vm1173_vm4, %v1939_v43, 0 }
 0x14b   :  { %v510_v49 = vmax.f32 %v507_v48, 0.0 }
 0x14d   :  { %v517_v50 = vpack.c.bf16 %v510_v49, %v510_v49 }
 0x14e   :  { %v495_v51 = vpop.f32.mrf.mxu2 }
 0x14f   :  { %1657 = vmatmul.msk.bf16.vlgmr.msrb.gmra.mxu1 %vm540_vm2, %v517_v50 }
 0x150   :  { %1269 = vmatpush.bf16.xpose.msrb.mxu1 %v1235_v58 }
 0x15f   :  { %1760 = vmatmul.msk.bf16.vlgmr.msra.gmra.mxu1 %vm835_vm1, %v1908_v37  ;;  %v1196_v37 = vsel %vm1173_vm4, %v1932_v35, 0 }
 0x176   :  { %v910_v1 = vpop.f32.mrf.mxu2 }
 0x17e   :  { %v912_v3 = vpop.f32.mrf.mxu2 }
 0x1cc   :  { %v553_v59 = vpop.f32.mrf.mxu1 }
 0x1cd   :  { %v554_v60 = vadd.f32 %v1958_v57, %v553_v59  ;;  %v1214_v57 = vsel %vm1173_vm4, %v1938_v54, 0  ;;  %v1929_v59 = vld [vmem:[%s2564_s18 + $0x18] sm:$0xff] }
 0x1cf   :  { %v557_v62 = vmax.f32 %v554_v60, 0.0  ;;  %v1937_v60 = vld [vmem:[%s2564_s18 + $0x58] sm:$0xff] }
 0x1d1   :  { %v566_v63 = vpack.c.bf16 %v557_v62, %v291_v61  ;;  %v1187_v61 = vsel %vm1173_vm4, %v1929_v59, 0  ;;  %v1211_v62 = vsel %vm1173_vm4, %v1937_v60, 0 }
 0x1d3   :  { %1674 = vmatmul.msk.bf16.vlgmr.msrb.gmra.mxu3 %vm274_vm0, %v566_v63  ;;  %1691 = vmatmul.msk.bf16.vlgmr.msra.gmra.mxu0 %vm274_vm0, %v566_v63  ;;  %v1944_v63 = vld [vmem:[%s2564_s18 + $0x90] sm:$0xff] }
 0x1d4   :  { %v555_v0 = vpop.f32.mrf.mxu1 }
 0x1d5   :  { %v1232_v0 = vsel %vm1173_vm4, %v1944_v63, 0 }
 0x1d6   :  { %1270 = vmatpush.bf16.xpose.msrb.mxu1 %v1232_v0 }
 0x1dc   :  { %v896_v2 = vpop.f32.mrf.mxu1 }
 0x1dd   :  { %v915_v6 = vmax.f32 %v896_v2, %v910_v1 }
 0x1e4   :  { %v898_v4 = vpop.f32.mrf.mxu1 }
 0x1e5   :  { %v918_v5 = vmax.f32 %v898_v4, %v912_v3 }
 0x1e7   :  { %919 = vmax.xlane.f32.xlu0 %v918_v5  ;;  %v1943_v5 = vld [vmem:[%s2564_s18 + $0x88] sm:$0xff] }
 0x1ef   :  { %916 = vmax.xlane.f32.xlu0 %v915_v6  ;;  %v1229_v6 = vsel %vm1173_vm4, %v1943_v5, 0 }
 0x1f0   :  { %1271 = vmatpush.bf16.xpose.msrb.mxu1 %v1229_v6 }
 0x250   :  { %v657_v31 = vpop.f32.mrf.mxu0 }
 0x256   :  { %v607_v8 = vpop.f32.mrf.mxu3 }
 0x257   :  { %v2398_v9 = vadd.f32 %v1960_v7, %v607_v8  ;;  %v1927_v8 = vld [vmem:[%s2564_s18 + $0x8] sm:$0xff] }
 0x258   :  { %v659_v32 = vpop.f32.mrf.mxu0 }
 0x259   :  { %v694_v10 = vsel %vm678_vm3, %v2398_v9, -inf }
 0x25a   :  { %v920_v11 = vpop.xlane.xlu0 %919  ;;  %695 = vmax.xlane.f32.xlu1 %v694_v10  ;;  %v1935_v10 = vld [vmem:[%s2564_s18 + $0x48] sm:$0xff] }
 0x25b   :  { %v923_v12 = vsub.f32 %v898_v4, %v920_v11  ;;  %v924_v16 = vsub.f32 %v912_v3, %v920_v11  ;;  %v1942_v11 = vld [vmem:[%s2564_s18 + $0x80] sm:$0xff] }
 0x25d   :  { %v929_v13 = vmul.f32 1.442695, %v923_v12  ;;  %v931_v21 = vmul.f32 1.442695, %v924_v16  ;;  %v1181_v12 = vsel %vm1173_vm4, %v1927_v8, 0  ;;  %v1926_v16 = vld [vmem:[%s2564_s18] sm:$0xff] }
 0x25e   :  { %v609_v14 = vpop.f32.mrf.mxu3 }
 0x25f   :  { %v2402_v15 = vadd.f32 %v1960_v7, %v609_v14  ;;  %1961 = vpow2.f32 %v929_v13  ;;  %v1205_v13 = vsel %vm1173_vm4, %v1935_v10, 0  ;;  %v1226_v14 = vsel %vm1173_vm4, %v1942_v11, 0 }
 0x260   :  { %1272 = vmatpush.bf16.xpose.msrb.mxu1 %v1226_v14 }
 0x261   :  { %v697_v17 = vsel %vm678_vm3, %v2402_v15, -inf  ;;  %v667_v59 = vmul.f32 %v2402_v15, %v2402_v15 }
 0x262   :  { %v917_v18 = vpop.xlane.xlu0 %916  ;;  %698 = vmax.xlane.f32.xlu0 %v697_v17  ;;  %v1934_v17 = vld [vmem:[%s2564_s18 + $0x40] sm:$0xff] }
 0x263   :  { %v921_v19 = vsub.f32 %v896_v2, %v917_v18  ;;  %v922_v20 = vsub.f32 %v910_v1, %v917_v18  ;;  %v1928_v1 = vld [vmem:[%s2564_s18 + $0x10] sm:$0xff]  ;;  %v1178_v18 = vsel %vm1173_vm4, %v1926_v16, 0 }
 0x264   :  { %v1936_v2 = vld [vmem:[%s2564_s18 + $0x50] sm:$0xff]  ;;  %v1184_v3 = vsel %vm1173_vm4, %v1928_v1, 0 }
 0x265   :  { %v925_v22 = vmul.f32 1.442695, %v921_v19  ;;  %v927_v23 = vmul.f32 1.442695, %v922_v20  ;;  %v1962_v24 = vpop.eup %1961  ;;  %v1208_v4 = vsel %vm1173_vm4, %v1936_v2, 0  ;;  %v1202_v19 = vsel %vm1173_vm4, %v1934_v17, 0 }
 0x266   :  { %947 = vmatpush.xpose.msra.mxu3 %v1962_v24  ;;  %v1925_v20 = vld [vmem:[%s2565_s19] sm:$0xff] }
 0x267   :  { %1963 = vpow2.f32 %v925_v22  ;;  %1850 = vmatmul.msk.bf16.vlgmr.msrb.gmra.mxu1 %vm1173_vm4, %v1925_v20 }
 0x268   :  { %1965 = vpow2.f32 %v931_v21 }
 0x269   :  { %1967 = vpow2.f32 %v927_v23 }
 0x26d   :  { %v1964_v25 = vpop.eup %1963 }
 0x26e   :  { %v1966_v26 = vpop.eup %1965  ;;  %948 = vmatpush.xpose.msra.mxu3 %v1964_v25  ;;  %v977_v27 = vpack.c.bf16 %v1962_v24, %v1964_v25 }
 0x26f   :  { %v1968_v28 = vpop.eup %1967 }
 0x270   :  { %989 = vmatpush.bf16.msrb.mxu0 %v977_v27  ;;  %v978_v30 = vpack.c.bf16 %v1966_v26, %v1968_v28 }
 0x271   :  { %949 = vmatmul.f32.vlgmr.msra.gmra.mxu3 %v2035_v29 }
 0x272   :  { %967 = vmatpush.xpose.msrb.mxu3 %v1966_v26 }
 0x274   :  { %1237 = vmatpush.bf16.xpose.msra.mxu0 %v1199_v33 }
 0x276   :  { %968 = vmatpush.xpose.msrb.mxu3 %v1968_v28 }
 0x279   :  { %969 = vmatmul.f32.vlgmr.msrb.gmra.mxu3 %v2035_v29 }
 0x27a   :  { %1002 = vmatpush.bf16.msra.mxu3 %v978_v30 }
 0x27c   :  { %1238 = vmatpush.bf16.xpose.msra.mxu0 %v1196_v37 }
 0x27e   :  { %1251 = vmatpush.bf16.xpose.msrb.mxu3 %v1223_v34 }
 0x284   :  { %1239 = vmatpush.bf16.xpose.msra.mxu0 %v1193_v46 }
 0x286   :  { %1252 = vmatpush.bf16.xpose.msrb.mxu3 %v1220_v38 }
 0x28c   :  { %1240 = vmatpush.bf16.xpose.msra.mxu0 %v1190_v56 }
 0x28e   :  { %1253 = vmatpush.bf16.xpose.msrb.mxu3 %v1217_v47 }
 0x294   :  { %1241 = vmatpush.bf16.xpose.msra.mxu0 %v1187_v61 }
 0x296   :  { %1254 = vmatpush.bf16.xpose.msrb.mxu3 %v1214_v57 }
 0x29c   :  { %1242 = vmatpush.bf16.xpose.msra.mxu0 %v1184_v3 }
 0x29e   :  { %1255 = vmatpush.bf16.xpose.msrb.mxu3 %v1211_v62  ;;  %v666_v62 = vmul.f32 %v2398_v9, %v2398_v9 }
 0x2a4   :  { %1243 = vmatpush.bf16.xpose.msra.mxu0 %v1181_v12 }
 0x2a6   :  { %1256 = vmatpush.bf16.xpose.msrb.mxu3 %v1208_v4 }
 0x2ac   :  { %1244 = vmatpush.bf16.xpose.msra.mxu0 %v1178_v18 }
 0x2ae   :  { %1257 = vmatpush.bf16.xpose.msrb.mxu3 %v1205_v13 }
 0x2b6   :  { %1258 = vmatpush.bf16.xpose.msrb.mxu3 %v1202_v19 }
 0x2cd   :  { %v696_v39 = vpop.xlane.xlu1 %695 }
 0x2ce   :  { %v700_v40 = vsub.f32 %v2398_v9, %v696_v39  ;;  %v1959_v39 = vld [vmem:[%s2561_s15] ss:$0 sm:$0xff] }
 0x2d0   :  { %v702_v41 = vmul.f32 1.442695, %v700_v40  ;;  %v1012_v40 = vld [vmem:[%s2582_s2] sm:$0xff] }
 0x2d2   :  { %1969 = vpow2.f32 %v702_v41  ;;  %v1013_v41 = vld [vmem:[%s2582_s2 + $0x8] sm:$0xff] }
 0x2d5   :  { %v699_v44 = vpop.xlane.xlu0 %698 }
 0x2d6   :  { %v701_v45 = vsub.f32 %v2402_v15, %v699_v44  ;;  %v660_v44 = vadd.f32 %v1959_v39, %v659_v32 }
 0x2d8   :  { %v1970_v48 = vpop.eup %1969  ;;  %v704_v49 = vmul.f32 1.442695, %v701_v45 }
 0x2d9   :  { %v706_v50 = vsel %vm678_vm3, %v1970_v48, 0.0 }
 0x2da   :  { %1971 = vpow2.f32 %v704_v49  ;;  %707 = vadd.xlane.f32.xlu1 %v706_v50  ;;  %v658_v49 = vadd.f32 %v1959_v39, %v657_v31 }
 0x2dc   :  { %v662_v53 = vmul.f32 2.0, %v658_v49 }
 0x2de   :  { %v670_v56 = vmul.f32 1.442695, %v662_v53  ;;  %v664_v2 = vadd.f32 1.0, %v662_v53 }
 0x2e0   :  { %v2435_v51 = vpop.eup %1971  ;;  %v668_v6 = vsub.f32 %v664_v2, %v666_v62 }
 0x2e1   :  { %v709_v52 = vsel %vm678_vm3, %v2435_v51, 0.0 }
 0x2e2   :  { %710 = vadd.xlane.f32.xlu1 %v709_v52  ;;  %v663_v52 = vmul.f32 2.0, %v660_v44 }
 0x2e4   :  { %v1274_v45 = vpop.f32.mrf.mxu1  ;;  %v672_v55 = vmul.f32 1.442695, %v663_v52  ;;  %v665_v63 = vadd.f32 1.0, %v663_v52 }
 0x2e5   :  { %v1279_v3 = vsel %vm274_vm0, %v1274_v45, -inf }
 0x2e6   :  { %v669_v4 = vsub.f32 %v665_v63, %v667_v59 }
 0x2ec   :  { %v1276_v57 = vpop.f32.mrf.mxu1 }
 0x2ed   :  { %v1284_v60 = vsel %vm274_vm0, %v1276_v57, -inf }
 0x2f4   :  { %v950_v7 = vpop.f32.mrf.mxu3 }
 0x2fc   :  { %v970_v21 = vpop.f32.mrf.mxu3 }
 0x2fd   :  { %v971_v22 = vadd.f32 %v970_v21, %v950_v7 }
 0x2ff   :  { %1973 = vrcp.f32 %v971_v22 }
 0x305   :  { %v1974_v24 = vpop.eup %1973 }
 0x306   :  { %v974_v26 = vperm.slane %v1974_v24, 0 }
 0x34d   :  { %v708_v23 = vpop.xlane.xlu1 %707 }
 0x34e   :  { %1975 = vrcp.f32 %v708_v23 }
 0x354   :  { %v1976_v25 = vpop.eup %1975 }
 0x355   :  { %v714_v27 = vmul.f32 %v1976_v25, %v1970_v48 }
 0x357   :  { %v975_v28 = vmul.f32 %v974_v26, %v714_v27 }
 0x359   :  { %v976_v30 = vpack.c.bf16 %v975_v28, %v975_v28 }
 0x35b   :  { %1762 = vmatmul.msk.bf16.vlgmr.msrb.gmra.mxu0 %vm678_vm3, %v976_v30  ;;  %1763 = vmatmul.msk.bf16.vlgmr.msra.gmra.mxu3 %vm678_vm3, %v976_v30 }
 0x36b   :  { %1848 = vmatmul.msk.bf16.vlgmr.msra.gmra.mxu0 %vm1173_vm4, %v1925_v20  ;;  %1849 = vmatmul.msk.bf16.vlgmr.msrb.gmra.mxu3 %vm1173_vm4, %v1925_v20 }
 0x3d8   :  { %v991_v33 = vpop.f32.mrf.mxu0 }
 0x3d9   :  { %1977 = vlog2.f32 %v991_v33 }
 0x3de   :  { %v1004_v34 = vpop.f32.mrf.mxu3 }
 0x3df   :  { %1979 = vlog2.f32 %v1004_v34  ;;  %v1978_v36 = vpop.eup %1977 }
 0x3e0   :  { %v993_v35 = vpop.f32.mrf.mxu0  ;;  %v1009_v37 = vmul.f32 0.6931472, %v1978_v36  ;;  %1981 = vpow2.f32 %v672_v55 }
 0x3e1   :  { %1983 = vpow2.f32 %v670_v56 }
 0x3e2   :  { %v1014_v47 = vmul.f32 %v1012_v40, %v1009_v37 }
 0x3e5   :  { %v1980_v38 = vpop.eup %1979 }
 0x3e6   :  { %v1011_v42 = vmul.f32 0.6931472, %v1980_v38  ;;  %v1006_v43 = vpop.f32.mrf.mxu3  ;;  %v1982_v5 = vpop.eup %1981 }
 0x3e7   :  { %v1984_v7 = vpop.eup %1983  ;;  %v675_v15 = vsub.f32 %v669_v4, %v1982_v5 }
 0x3e8   :  { %v1246_v46 = vpop.f32.mrf.mxu0  ;;  %v1015_v48 = vmul.f32 %v1013_v41, %v1011_v42  ;;  %v674_v10 = vsub.f32 %v668_v6, %v1984_v7 }
 0x3e9   :  { %v1280_v8 = vmax.f32 %v1246_v46, %v1279_v3  ;;  %v677_v12 = vmul.f32 -0.5, %v675_v15 }
 0x3ea   :  { %v1016_v50 = vadd.f32 %v1015_v48, %v1014_v47  ;;  %v676_v13 = vmul.f32 -0.5, %v674_v10 }
 0x3eb   :  { %v680_v9 = vsel %vm678_vm3, %v677_v12, 0.0 }
 0x3ec   :  { %1017 = vadd.xlane.f32.xlu0 %v1016_v50  ;;  %v679_v14 = vsel %vm678_vm3, %v676_v13, 0.0  ;;  %v1432_v13 = vld [vmem:[%s2583_s7 + $0x8] sm:$0xff] }
 0x3ed   :  { %v681_v16 = vadd.f32 %v680_v9, %v679_v14  ;;  %v1431_v9 = vld [vmem:[%s2583_s7] sm:$0xff] }
 0x3ee   :  { %v1260_v54 = vpop.f32.mrf.mxu3 }
 0x3ef   :  { %v1281_v11 = vmax.f32 %v1280_v8, %v1260_v54 }
 0x3f0   :  { %v1248_v58 = vpop.f32.mrf.mxu0 }
 0x3f1   :  { %v1285_v61 = vmax.f32 %v1248_v58, %v1284_v60 }
 0x3f6   :  { %v1262_v0 = vpop.f32.mrf.mxu3 }
 0x3f7   :  { %v1286_v1 = vmax.f32 %v1285_v61, %v1262_v0 }
 0x3f9   :  { %1287 = vmax.xlane.f32.xlu2 %v1286_v1 }
 0x401   :  { %1282 = vmax.xlane.f32.xlu2 %v1281_v11  ;;  %v1433_v11 = vld [vmem:[%s2583_s7 + $0x10] sm:$0xff] }
 0x409   :  { %682 = vadd.xlane.f32.xlu2 %v681_v16 }
 0x45f   :  { %v1018_v22 = vpop.xlane.xlu0 %1017 }
 0x460   :  { %v1019_v24 = vrot.slane %v1018_v22, 4 }
 0x462   :  { %v1020_v35 = vadd.f32 %v1019_v24, %v1018_v22 }
 0x464   :  { %v1021_v36 = vrot.slane %v1020_v35, 2 }
 0x466   :  { %v1022_v44 = vadd.f32 %v1021_v36, %v1020_v35 }
 0x468   :  { %v1023_v50 = vrot.slane %v1022_v44, 1 }
 0x46c   :  { %v1288_v17 = vpop.xlane.xlu2 %1287 }
 0x46d   :  { %v1292_v18 = vsub.f32 %v1248_v58, %v1288_v17  ;;  %v1293_v19 = vsub.f32 %v1262_v0, %v1288_v17  ;;  %v1294_v21 = vsub.f32 %v1276_v57, %v1288_v17  ;;  %v711_v58 = vpop.xlane.xlu1 %710 }
 0x46f   :  { %v1301_v20 = vmul.f32 1.442695, %v1292_v18  ;;  %v1303_v23 = vmul.f32 1.442695, %v1293_v19  ;;  %v1305_v25 = vmul.f32 1.442695, %v1294_v21 }
 0x471   :  { %1985 = vpow2.f32 %v1301_v20 }
 0x472   :  { %1987 = vpow2.f32 %v1303_v23 }
 0x473   :  { %1989 = vpow2.f32 %v1305_v25 }
 0x474   :  { %v1283_v26 = vpop.xlane.xlu2 %1282 }
 0x475   :  { %v1289_v27 = vsub.f32 %v1246_v46, %v1283_v26  ;;  %v1290_v28 = vsub.f32 %v1260_v54, %v1283_v26  ;;  %v1291_v30 = vsub.f32 %v1274_v45, %v1283_v26  ;;  %v1024_v54 = vadd.f32 %v1023_v50, %v1022_v44 }
 0x477   :  { %v1986_v31 = vpop.eup %1985  ;;  %v1295_v32 = vmul.f32 1.442695, %v1289_v27  ;;  %v1297_v33 = vmul.f32 1.442695, %v1290_v28  ;;  %v1299_v34 = vmul.f32 1.442695, %v1291_v30 }
 0x478   :  { %1330 = vmatpush.xpose.msrb.mxu2 %v1986_v31  ;;  %v1988_v38 = vpop.eup %1987 }
 0x479   :  { %1991 = vpow2.f32 %v1295_v32  ;;  %v1990_v40 = vpop.eup %1989 }
 0x47a   :  { %1993 = vpow2.f32 %v1297_v33 }
 0x47b   :  { %1995 = vpow2.f32 %v1299_v34 }
 0x47c   :  { %v683_v37 = vpop.xlane.xlu2 %682  ;;  %1997 = vrcp.f32 %v711_v58 }
 0x47d   :  { %v684_v39 = vrot.slane %v683_v37, 4 }
 0x47f   :  { %v1992_v41 = vpop.eup %1991  ;;  %v685_v42 = vadd.f32 %v684_v39, %v683_v37 }
 0x480   :  { %v1994_v43 = vpop.eup %1993  ;;  %1331 = vmatpush.xpose.msrb.mxu2 %v1992_v41  ;;  %v1380_v55 = vpack.c.bf16 %v1986_v31, %v1992_v41 }
 0x481   :  { %v1996_v45 = vpop.eup %1995  ;;  %v686_v46 = vrot.slane %v685_v42, 2  ;;  %v1381_v47 = vpack.c.bf16 %v1988_v38, %v1994_v43 }
 0x482   :  { %v1382_v48 = vpack.c.bf16 %v1990_v40, %v1996_v45  ;;  %v1998_v62 = vpop.eup %1997 }
 0x483   :  { %1406 = vmatpush.bf16.msrb.mxu0 %v1381_v47  ;;  %1332 = vmatmul.f32.vlgmr.msrb.gmra.mxu2 %v2035_v29  ;;  %v687_v49 = vadd.f32 %v686_v46, %v685_v42  ;;  %v715_v0 = vmul.f32 %v1998_v62, %v2435_v51 }
 0x484   :  { %1350 = vmatpush.xpose.msra.mxu2 %v1988_v38  ;;  %1419 = vmatpush.bf16.msra.mxu1 %v1382_v48 }
 0x485   :  { %v688_v52 = vrot.slane %v687_v49, 1 }
 0x487   :  { %v689_v53 = vadd.f32 %v688_v52, %v687_v49 }
 0x488   :  { %1351 = vmatpush.xpose.msra.mxu2 %v1994_v43 }
 0x489   :  { %1946 = vpush %v689_v53 }
 0x48a   :  { %1948 = vpush %v1024_v54 }
 0x48b   :  { %1352 = vmatmul.f32.vlgmr.msra.gmra.mxu2 %v2035_v29 }
 0x48c   :  { %1851 = vmatpush.xpose.msk.msrb.mxu2 %vm274_vm0, %v1990_v40 }
 0x490   :  { %1852 = vmatpush.xpose.msk.msrb.mxu2 %vm274_vm0, %v1996_v45 }
 0x493   :  { %1853 = vmatmul.msk.f32.vlgmr.msrb.gmra.mxu2 %vm274_vm0, %v2035_v29 }
 0x494   :  { %1393 = vmatpush.bf16.msra.mxu2 %v1380_v55 }
 0x4ba   :  { %s1947_s15 = spop %1946 }
 0x4bb   :  { %s691_s27 = smul.f32 0.125, %s1947_s15  ;;  %s1949_s4 = spop %1948 }
 0x4bd   :  { %693 = sst [smem:[#allocation4]] %s691_s27 }
 0x4be   :  { %1471 = dma.smem_to_hbm %s2036_s16, 16, %s1469_s0, [#allocation5]  }
 0x506   :  { %v1333_v56 = vpop.f32.mrf.mxu2 }
 0x50e   :  { %v1353_v57 = vpop.f32.mrf.mxu2 }
 0x50f   :  { %v1354_v59 = vadd.f32 %v1353_v57, %v1333_v56 }
 0x516   :  { %v1373_v60 = vpop.f32.mrf.mxu2 }
 0x517   :  { %v1374_v61 = vadd.f32 %v1373_v60, %v1354_v59 }
 0x519   :  { %1999 = vrcp.f32 %v1374_v61 }
 0x51f   :  { %v2000_v63 = vpop.eup %1999 }
 0x520   :  { %v1377_v1 = vperm.slane %v2000_v63, 0 }
 0x522   :  { %v1378_v2 = vmul.f32 %v1377_v1, %v715_v0 }
 0x524   :  { %v1379_v3 = vpack.c.bf16 %v1378_v2, %v1378_v2 }
 0x526   :  { %1854 = vmatmul.msk.bf16.vlgmr.msra.gmra.mxu2 %vm678_vm3, %v1379_v3  ;;  %1855 = vmatmul.msk.bf16.vlgmr.msrb.gmra.mxu0 %vm678_vm3, %v1379_v3 }
 0x527   :  { %1856 = vmatmul.msk.bf16.vlgmr.msra.gmra.mxu1 %vm678_vm3, %v1379_v3 }
 0x5a3   :  { %v1408_v29 = vpop.f32.mrf.mxu0 }
 0x5a4   :  { %v1421_v4 = vpop.f32.mrf.mxu1 }
 0x5a5   :  { %2001 = vlog2.f32 %v1421_v4 }
 0x5a6   :  { %2003 = vlog2.f32 %v1408_v29 }
 0x5a9   :  { %v1395_v5 = vpop.f32.mrf.mxu2 }
 0x5aa   :  { %2005 = vlog2.f32 %v1395_v5 }
 0x5ab   :  { %v2002_v6 = vpop.eup %2001  ;;  %v1410_v7 = vpop.f32.mrf.mxu0 }
 0x5ac   :  { %v2004_v8 = vpop.eup %2003  ;;  %v1423_v15 = vpop.f32.mrf.mxu1  ;;  %v1430_v51 = vmul.f32 0.6931472, %v2002_v6 }
 0x5ad   :  { %v1428_v10 = vmul.f32 0.6931472, %v2004_v8 }
 0x5ae   :  { %v1436_v17 = vmul.f32 %v1433_v11, %v1430_v51 }
 0x5af   :  { %v1435_v18 = vmul.f32 %v1432_v13, %v1428_v10 }
 0x5b0   :  { %v2006_v12 = vpop.eup %2005  ;;  %v1438_v21 = vsel %vm274_vm0, %v1436_v17, 0.0 }
 0x5b1   :  { %v1426_v14 = vmul.f32 0.6931472, %v2006_v12  ;;  %v1397_v16 = vpop.f32.mrf.mxu2 }
 0x5b3   :  { %v1434_v19 = vmul.f32 %v1431_v9, %v1426_v14 }
 0x5b5   :  { %v1437_v20 = vadd.f32 %v1435_v18, %v1434_v19 }
 0x5b7   :  { %v1439_v22 = vadd.f32 %v1438_v21, %v1437_v20 }
 0x5b9   :  { %1440 = vadd.xlane.f32.xlu1 %v1439_v22 }
 0x62c   :  { %v1441_v23 = vpop.xlane.xlu1 %1440 }
 0x62d   :  { %v1442_v24 = vrot.slane %v1441_v23, 4 }
 0x62f   :  { %v1443_v25 = vadd.f32 %v1442_v24, %v1441_v23 }
 0x631   :  { %v1444_v26 = vrot.slane %v1443_v25, 2 }
 0x633   :  { %v1445_v27 = vadd.f32 %v1444_v26, %v1443_v25 }
 0x635   :  { %v1446_v28 = vrot.slane %v1445_v27, 1 }
 0x637   :  { %v1447_v30 = vadd.f32 %v1446_v28, %v1445_v27 }
 0x639   :  { %1950 = vpush %v1447_v30 }
 0x66a   :  { %s1951_s17 = spop %1950 }
 0x66b   :  { %s1449_s30 = sadd.f32 %s1951_s17, %s1949_s4 }
 0x66d   :  { %s1450_s10 = ssub.f32 0.0, %s1449_s30 }
 0x66f   :  { %s1451_s21 = smul.f32 0.125, %s1450_s10 }
 0x671   :  { %1453 = sst [smem:[#allocation2]] %s1451_s21 }
 0x672   :  { %1462 = dma.smem_to_hbm %s2037_s23, 16, %s1460_s9, [#allocation3]  }
 0x673   :  { %2031 = dma.done.wait [#allocation3], 16  }
 0x674   :  { %2032 = vsyncadd [#allocation3], 4294967280 }
 0x675   :  { %2033 = dma.done.wait [#allocation5], 16  }
 0x676   :  { %2034 = vsyncadd [#allocation5], 4294967280 }
 0x677   :  { %1480 = sfence }
 0x678   :  { %1481 = vsyncpa [#allocation3], 1 }
 0x679   :  { %1482 = vsyncpa [#allocation5], 1 }

</bundles_post_ra>
